<compile_context>
chip_gen: v7x
topology: tpu7x:2x2x1
jax: 0.10.0
libtpu: 0.0.40
codegen_flags: <defaults>
</compile_context>

<pallas_src>
import functools

import jax
import jax.numpy as jnp
import numpy as np
from jax import lax
from jax.experimental import pallas as pl
from jax.experimental.pallas import tpu as pltpu

_LANES = 128
_SUBLANES = 8


def _round_up(x, m):
    return ((x + m - 1) // m) * m


def _wmse_partial_kernel(alpha, rows, tm, steps_per_shard,
                         p_ref, t_ref, acc_ref):
    """Accumulate per-(sublane,lane) partial sums of (p-t)^2 * exp(|t|*alpha)."""
    # acc_ref is a revisited (1, 8, 128) block along the reduction axis.
    @pl.when(pl.program_id(1) == 0)
    def _():
        acc_ref[...] = jnp.zeros_like(acc_ref)

    # Logical (unclamped) tile position.  The index map clamps the block index
    # so the DMA always stays in bounds; any row whose *logical* index is
    # >= rows holds duplicated / undefined data and is masked out below.
    step = pl.program_id(0) * steps_per_shard + pl.program_id(1)
    start = step * tm

    # Cast in VMEM — inputs travel HBM->VMEM in their native (possibly bf16) dtype.
    p = p_ref[...].astype(jnp.float32)
    t = t_ref[...].astype(jnp.float32)
    diff = p - t
    wse = diff * diff * jnp.exp(jnp.abs(t) * alpha)   # EUP exp; VPU abs/mul

    def _accumulate(x):
        # (tm, 128) -> (tm//8, 8, 128) then reduce the leading (non-layout)
        # axis: pure VPU vreg adds, no XLU cross-sublane reduce, full (8,128)
        # unmasked stores, and 8x shorter serial f32 accumulation chains.
        acc_ref[...] += jnp.sum(
            x.reshape(tm // _SUBLANES, _SUBLANES, _LANES), axis=0, keepdims=True)

    @pl.when(start + tm <= rows)          # fast path: full tile, no masking
    def _():
        _accumulate(wse)

    @pl.when(start + tm > rows)           # tail / duplicated tile: mask by row
    def _():
        row_id = start + lax.broadcasted_iota(jnp.int32, (tm, _LANES), 0)
        _accumulate(jnp.where(row_id < rows, wse, 0.0))


@functools.partial(jax.jit, static_argnames=("alpha", "tm"))
def weighted_mse(predictions, targets, *, alpha=0.1, tm=8192):
    """Forward of WeightedMSE: mean((pred - targ)^2 * exp(|targ| * alpha))."""
    n = predictions.size
    p = predictions.reshape(-1)
    t = targets.reshape(-1)

    # Lane-dense (rows, 128) view.  The reshape is free when n % 128 == 0.
    rows = -(-n // _LANES)
    min_isz = min(p.dtype.itemsize, t.dtype.itemsize)
    sub = (_SUBLANES * 4) // min_isz          # 8 (f32) / 16 (bf16) / 32 (i8, fp8)
    rows_alloc = max(rows, sub)               # tiny inputs: at least one sub-group

    pad = rows_alloc * _LANES - n
    if pad:
        # Only hit when n % 128 != 0 (or n < sub*128).  Zero pads contribute
        # (0-0)^2 * exp(0) = 0; the mean still divides by the original n.
        # TODO(synk): a data-dependent lane mask could avoid even this tiny copy.
        p = jnp.pad(p, (0, pad))
        t = jnp.pad(t, (0, pad))
    rows = rows_alloc
    p2 = p.reshape(rows, _LANES)
    t2 = t.reshape(rows, _LANES)

    # Tile height: dtype-aware sublane multiple, never larger than the array
    # (so every DMA source is in bounds; the tail tile is masked in-kernel).
    tm_eff = min(_round_up(tm, sub), (rows // sub) * sub)

    steps = -(-rows // tm_eff)
    # Unconditional megacore split: both v7x TensorCores get a shard whenever
    # there is more than one step; the clamped index map + in-kernel mask make
    # the (possibly duplicated) last tile of shard 1 contribute exactly 0.
    nshards = 2 if steps >= 2 else 1
    steps_per_shard = -(-steps // nshards)
    last_block = steps - 1

    def in_map(s, i, sps=steps_per_shard, last=last_block):
        return (jnp.minimum(s * sps + i, last), 0)

    kernel = functools.partial(_wmse_partial_kernel, float(alpha), rows,
                               tm_eff, steps_per_shard)

    # VMEM budget: 2 inputs x 2 pipeline buffers in native dtype + headroom,
    # capped well under v7x's 64 MiB physical VMEM.
    in_bytes = 2 * tm_eff * _LANES * (p2.dtype.itemsize + t2.dtype.itemsize)
    vmem_limit = int(min(max(in_bytes + (8 << 20), 32 << 20), 56 << 20))

    partials = pl.pallas_call(
        kernel,
        out_shape=jax.ShapeDtypeStruct((nshards, _SUBLANES, _LANES), jnp.float32),
        grid_spec=pltpu.PrefetchScalarGridSpec(
            num_scalar_prefetch=0,
            grid=(nshards, steps_per_shard),
            in_specs=[
                pl.BlockSpec((tm_eff, _LANES), in_map),
                pl.BlockSpec((tm_eff, _LANES), in_map),
            ],
            out_specs=pl.BlockSpec((1, _SUBLANES, _LANES),
                                   lambda s, i: (s, 0, 0)),
        ),
        compiler_params=pltpu.CompilerParams(
            dimension_semantics=("parallel", "arbitrary"),
            vmem_limit_bytes=vmem_limit,
        ),
    )(p2, t2)

    # Tiny final reduce (nshards*8*128 floats) + mean over the ORIGINAL count.
    return jnp.sum(partials) / n


def _reference(predictions, targets, alpha=0.1):
    """Pure-JAX reference matching the PyTorch WeightedMSE forward."""
    se = (predictions - targets) ** 2
    w = jnp.exp(jnp.abs(targets) * alpha)
    return jnp.mean(se * w)


if __name__ == "__main__":
    key = jax.random.PRNGKey(0)
    k1, k2, k3, k4 = jax.random.split(key, 4)

    # 3D-convnet-style prediction/target volumes: (N, C, D, H, W).
    shape = (2, 4, 8, 16, 16)
    pred = jax.random.normal(k1, shape, dtype=jnp.float32)
    targ = jax.random.normal(k2, shape, dtype=jnp.float32)

    out = jax.block_until_ready(weighted_mse(pred, targ, alpha=0.1))
    ref = _reference(pred, targ, 0.1)
    np.testing.assert_allclose(np.asarray(out), np.asarray(ref),
                               rtol=1e-4, atol=1e-6)

    # Multi-tile grid with an ODD step count + partial last tile: exercises the
    # unconditional megacore split, the clamped index map and the row mask.
    out_tiled = jax.block_until_ready(weighted_mse(pred, targ, alpha=0.1, tm=48))
    np.testing.assert_allclose(np.asarray(out_tiled), np.asarray(ref),
                               rtol=1e-4, atol=1e-6)

    # Ragged element count (n % 128 != 0 -> tiny zero-pad tail path).
    shape2 = (2, 3, 5, 7, 9)
    pred2 = jax.random.normal(k3, shape2, dtype=jnp.float32)
    targ2 = jax.random.normal(k4, shape2, dtype=jnp.float32)
    out2 = jax.block_until_ready(weighted_mse(pred2, targ2, alpha=0.1))
    ref2 = _reference(pred2, targ2, 0.1)
    np.testing.assert_allclose(np.asarray(out2), np.asarray(ref2),
                               rtol=1e-4, atol=1e-6)

    # bf16 inputs: native-dtype HBM reads, f32 cast + accumulate inside kernel.
    pred3 = pred.astype(jnp.bfloat16)
    targ3 = targ.astype(jnp.bfloat16)
    out3 = jax.block_until_ready(weighted_mse(pred3, targ3, alpha=0.1))
    ref3 = _reference(pred3.astype(jnp.float32), targ3.astype(jnp.float32), 0.1)
    np.testing.assert_allclose(np.asarray(out3), np.asarray(ref3),
                               rtol=1e-3, atol=1e-5)

    print("KERNEL_OK")
</pallas_src>

<mosaic_0001>
module attributes {stable_mosaic.version = 11 : i64} {
  func.func @_wmse_partial_kernel(%arg0: i32, %arg1: i32, %arg2: memref<128x128xf32, #tpu.memory_space<vmem>>, %arg3: memref<128x128xf32, #tpu.memory_space<vmem>>, %arg4: memref<1x8x128xf32, #tpu.memory_space<vmem>>) attributes {dimension_semantics = [#tpu.dimension_semantics<parallel>, #tpu.dimension_semantics<arbitrary>], iteration_bounds = array<i64: 1, 1>, scalar_prefetch = 0 : i64, scratch_operands = 0 : i64, tpu.core_type = #tpu.core_type<tc>, window_params = [{transform_indices = @transform_0, window_bounds = array<i64: 128, 128>}, {transform_indices = @transform_1, window_bounds = array<i64: 128, 128>}, {transform_indices = @transform_2, window_bounds = array<i64: 1, 8, 128>}]} {
    %c0_i32 = arith.constant 0 : i32
    %0 = arith.cmpi eq, %arg1, %c0_i32 : i32
    %1 = arith.extui %0 : i1 to i32
    %c0_i32_0 = arith.constant 0 : i32
    %2 = arith.cmpi ne, %1, %c0_i32_0 : i32
    scf.if %2 {
      %cst_10 = arith.constant 0.000000e+00 : f32
      %23 = vector.broadcast %cst_10 : f32 to vector<1x8x128xf32>
      %c0_11 = arith.constant 0 : index
      %c0_12 = arith.constant 0 : index
      %c0_13 = arith.constant 0 : index
      %24 = vector.load %arg4[%c0_11, %c0_12, %c0_13] : memref<1x8x128xf32, #tpu.memory_space<vmem>>, vector<1x8x128xf32>
      tpu.vector_store %arg4[%c0_11, %c0_12, %c0_13], %23 {strides = array<i32>} : memref<1x8x128xf32, #tpu.memory_space<vmem>>, vector<1x8x128xf32>,
    } else {
    }
    %c1_i32 = arith.constant 1 : i32
    %3 = arith.muli %arg0, %c1_i32 : i32
    %4 = arith.addi %3, %arg1 : i32
    %c128_i32 = arith.constant 128 : i32
    %5 = arith.muli %4, %c128_i32 : i32
    %c0 = arith.constant 0 : index
    %c0_1 = arith.constant 0 : index
    %6 = vector.load %arg2[%c0, %c0_1] : memref<128x128xf32, #tpu.memory_space<vmem>>, vector<128x128xf32>
    %c0_2 = arith.constant 0 : index
    %c0_3 = arith.constant 0 : index
    %7 = vector.load %arg3[%c0_2, %c0_3] : memref<128x128xf32, #tpu.memory_space<vmem>>, vector<128x128xf32>
    %8 = arith.subf %6, %7 : vector<128x128xf32>
    %9 = arith.mulf %8, %8 : vector<128x128xf32>
    %10 = math.absf %7 : vector<128x128xf32>
    %cst = arith.constant 1.000000e-01 : f32
    %11 = vector.broadcast %cst : f32 to vector<128x128xf32>
    %12 = arith.mulf %10, %11 : vector<128x128xf32>
    %13 = math.exp %12 : vector<128x128xf32>
    %14 = arith.mulf %9, %13 : vector<128x128xf32>
    %c128_i32_4 = arith.constant 128 : i32
    %15 = arith.addi %5, %c128_i32_4 : i32
    %c128_i32_5 = arith.constant 128 : i32
    %16 = arith.cmpi sle, %15, %c128_i32_5 : i32
    %17 = arith.extui %16 : i1 to i32
    %c0_i32_6 = arith.constant 0 : i32
    %18 = arith.cmpi ne, %17, %c0_i32_6 : i32
    scf.if %18 {
      %c0_10 = arith.constant 0 : index
      %c0_11 = arith.constant 0 : index
      %c0_12 = arith.constant 0 : index
      %23 = vector.load %arg4[%c0_10, %c0_11, %c0_12] : memref<1x8x128xf32, #tpu.memory_space<vmem>>, vector<1x8x128xf32>
      %24 = vector.shape_cast %14 : vector<128x128xf32> to vector<16x8x128xf32>
      %cst_13 = arith.constant dense<0.000000e+00> : vector<8x128xf32>
      %25 = vector.multi_reduction <add>, %24, %cst_13 [0] : vector<16x8x128xf32> to vector<8x128xf32>
      %26 = vector.shape_cast %25 : vector<8x128xf32> to vector<1x8x128xf32>
      %27 = arith.addf %23, %26 : vector<1x8x128xf32>
      %c0_14 = arith.constant 0 : index
      %c0_15 = arith.constant 0 : index
      %c0_16 = arith.constant 0 : index
      %28 = vector.load %arg4[%c0_14, %c0_15, %c0_16] : memref<1x8x128xf32, #tpu.memory_space<vmem>>, vector<1x8x128xf32>
      tpu.vector_store %arg4[%c0_14, %c0_15, %c0_16], %27 {strides = array<i32>} : memref<1x8x128xf32, #tpu.memory_space<vmem>>, vector<1x8x128xf32>,
    } else {
    }
    %c128_i32_7 = arith.constant 128 : i32
    %19 = arith.addi %5, %c128_i32_7 : i32
    %c128_i32_8 = arith.constant 128 : i32
    %20 = arith.cmpi sgt, %19, %c128_i32_8 : i32
    %21 = arith.extui %20 : i1 to i32
    %c0_i32_9 = arith.constant 0 : i32
    %22 = arith.cmpi ne, %21, %c0_i32_9 : i32
    scf.if %22 {
      %23 = tpu.iota {dimensions = array<i32: 0>} : vector<128x128xi32>
      %24 = vector.broadcast %5 : i32 to vector<128x128xi32>
      %25 = arith.addi %24, %23 : vector<128x128xi32>
      %c128_i32_10 = arith.constant 128 : i32
      %26 = vector.broadcast %c128_i32_10 : i32 to vector<128x128xi32>
      %27 = arith.cmpi slt, %25, %26 : vector<128x128xi32>
      %cst_11 = arith.constant 0.000000e+00 : f32
      %28 = vector.broadcast %cst_11 : f32 to vector<128x128xf32>
      %29 = arith.select %27, %14, %28 : vector<128x128xi1>, vector<128x128xf32>
      %c0_12 = arith.constant 0 : index
      %c0_13 = arith.constant 0 : index
      %c0_14 = arith.constant 0 : index
      %30 = vector.load %arg4[%c0_12, %c0_13, %c0_14] : memref<1x8x128xf32, #tpu.memory_space<vmem>>, vector<1x8x128xf32>
      %31 = vector.shape_cast %29 : vector<128x128xf32> to vector<16x8x128xf32>
      %cst_15 = arith.constant dense<0.000000e+00> : vector<8x128xf32>
      %32 = vector.multi_reduction <add>, %31, %cst_15 [0] : vector<16x8x128xf32> to vector<8x128xf32>
      %33 = vector.shape_cast %32 : vector<8x128xf32> to vector<1x8x128xf32>
      %34 = arith.addf %30, %33 : vector<1x8x128xf32>
      %c0_16 = arith.constant 0 : index
      %c0_17 = arith.constant 0 : index
      %c0_18 = arith.constant 0 : index
      %35 = vector.load %arg4[%c0_16, %c0_17, %c0_18] : memref<1x8x128xf32, #tpu.memory_space<vmem>>, vector<1x8x128xf32>
      tpu.vector_store %arg4[%c0_16, %c0_17, %c0_18], %34 {strides = array<i32>} : memref<1x8x128xf32, #tpu.memory_space<vmem>>, vector<1x8x128xf32>,
    } else {
    }
    return
  }
  func.func @transform_0(%arg0: i32, %arg1: i32) -> (i32, i32) {
    %c1_i32 = arith.constant 1 : i32
    %0 = arith.muli %arg0, %c1_i32 : i32
    %1 = arith.addi %0, %arg1 : i32
    %c0_i32 = arith.constant 0 : i32
    %2 = arith.minsi %1, %c0_i32 : i32
    %c0_i32_0 = arith.constant 0 : i32
    %c0_i32_1 = arith.constant 0 : i32
    return %2, %c0_i32_0 : i32, i32
  }
  func.func @transform_1(%arg0: i32, %arg1: i32) -> (i32, i32) {
    %c1_i32 = arith.constant 1 : i32
    %0 = arith.muli %arg0, %c1_i32 : i32
    %1 = arith.addi %0, %arg1 : i32
    %c0_i32 = arith.constant 0 : i32
    %2 = arith.minsi %1, %c0_i32 : i32
    %c0_i32_0 = arith.constant 0 : i32
    %c0_i32_1 = arith.constant 0 : i32
    return %2, %c0_i32_0 : i32, i32
  }
  func.func @transform_2(%arg0: i32, %arg1: i32) -> (i32, i32, i32) {
    %c0_i32 = arith.constant 0 : i32
    %c0_i32_0 = arith.constant 0 : i32
    %c0_i32_1 = arith.constant 0 : i32
    return %arg0, %c0_i32, %c0_i32_0 : i32, i32, i32
  }
}

</mosaic_0001>

<bundles_post_ra>
// kernel: weighted_mse.1
= control target key start
LH: loop header
LB: loop body
LE: loop exit
PB: predicated region body
PF: predicated region fallthrough
CT: control target
= control target key end

     0   :  { %s548_s1 = inlined_call_operand.vmem [shape: f32[128,128], index: 1, kind: input, shape index: {}]   ;;  %s549_s0 = inlined_call_operand.vmem [shape: f32[128,128], index: 0, kind: input, shape index: {}]   ;;  %s550_s2 = inlined_call_operand.vmem [shape: f32[1,8,128], index: 2, kind: output, shape index: {}]  }
   0x1   :  { %v98_v0 = vld [vmem:[%s548_s1] sm:$0xff]  ;;  %v99_v1 = vld [vmem:[%s548_s1 + $0x8] sm:$0xff]  ;;  %v100_v2 = vld [vmem:[%s548_s1 + $0x10] sm:$0xff] }
   0x2   :  { %v101_v3 = vld [vmem:[%s548_s1 + $0x18] sm:$0xff]  ;;  %v416_v4 = vld [vmem:[%s548_s1 + $0x20] sm:$0xff]  ;;  %v421_v5 = vld [vmem:[%s548_s1 + $0x28] sm:$0xff]  ;;  %v146_v7 = vand.u32 2147483647, %v98_v0 }
   0x3   :  { %v426_v6 = vld [vmem:[%s548_s1 + $0x30] sm:$0xff]  ;;  %v147_v8 = vand.u32 2147483647, %v99_v1  ;;  %v148_v9 = vand.u32 2147483647, %v100_v2  ;;  %v433_v13 = vld [vmem:[%s548_s1 + $0x38] sm:$0xff] }
   0x4   :  { %v149_v10 = vand.u32 2147483647, %v101_v3  ;;  %v150_v11 = vand.u32 2147483647, %v416_v4  ;;  %v151_v12 = vand.u32 2147483647, %v421_v5 }
   0x5   :  { %v438_v14 = vld [vmem:[%s548_s1 + $0x40] sm:$0xff]  ;;  %v152_v15 = vand.u32 2147483647, %v426_v6  ;;  %v162_v16 = vmul.f32 0.1, %v146_v7  ;;  %v447_v22 = vld [vmem:[%s548_s1 + $0x48] sm:$0xff] }
   0x6   :  { %v163_v17 = vmul.f32 0.1, %v147_v8  ;;  %v164_v18 = vmul.f32 0.1, %v148_v9  ;;  %v165_v19 = vmul.f32 0.1, %v149_v10 }
   0x7   :  { %v166_v20 = vmul.f32 0.1, %v150_v11  ;;  %v82_v21 = vld [vmem:[%s549_s0] sm:$0xff]  ;;  %v153_v23 = vand.u32 2147483647, %v433_v13  ;;  %v83_v31 = vld [vmem:[%s549_s0 + $0x8] sm:$0xff] }
   0x8   :  { %v167_v24 = vmul.f32 0.1, %v151_v12  ;;  %v154_v25 = vand.u32 2147483647, %v438_v14  ;;  %v168_v26 = vmul.f32 0.1, %v152_v15  ;;  %v114_v40 = vsub.f32 %v82_v21, %v98_v0 }
   0x9   :  { %v178_v27 = vmul.f32 1.442695, %v162_v16  ;;  %v180_v28 = vmul.f32 1.442695, %v163_v17  ;;  %v182_v29 = vmul.f32 1.442695, %v164_v18  ;;  %v115_v46 = vsub.f32 %v83_v31, %v99_v1 }
   0xa   :  { %v184_v30 = vmul.f32 1.442695, %v165_v19  ;;  %v84_v32 = vld [vmem:[%s549_s0 + $0x10] sm:$0xff]  ;;  %v186_v34 = vmul.f32 1.442695, %v166_v20  ;;  %v85_v38 = vld [vmem:[%s549_s0 + $0x18] sm:$0xff]  ;;  %v130_v55 = vmul.f32 %v114_v40, %v114_v40 }
   0xb   :  { %v460_v33 = vld [vmem:[%s548_s1 + $0x50] sm:$0xff]  ;;  %354 = vpow2.f32 %v178_v27  ;;  %v155_v35 = vand.u32 2147483647, %v447_v22  ;;  %v169_v36 = vmul.f32 0.1, %v153_v23  ;;  %v469_v39 = vld [vmem:[%s548_s1 + $0x58] sm:$0xff]  ;;  %v116_v47 = vsub.f32 %v84_v32, %v100_v2 }
   0xc   :  { %356 = vpow2.f32 %v180_v28  ;;  %v188_v37 = vmul.f32 1.442695, %v167_v24  ;;  %v156_v41 = vand.u32 2147483647, %v460_v33  ;;  %v170_v42 = vmul.f32 0.1, %v154_v25 }
   0xd   :  { %358 = vpow2.f32 %v182_v29  ;;  %v190_v43 = vmul.f32 1.442695, %v168_v26  ;;  %v86_v44 = vld [vmem:[%s549_s0 + $0x20] sm:$0xff]  ;;  %v157_v48 = vand.u32 2147483647, %v469_v39  ;;  %v87_v51 = vld [vmem:[%s549_s0 + $0x28] sm:$0xff]  ;;  %v117_v54 = vsub.f32 %v85_v38, %v101_v3 }
   0xe   :  { %360 = vpow2.f32 %v184_v30  ;;  %v478_v45 = vld [vmem:[%s548_s1 + $0x60] sm:$0xff]  ;;  %v171_v49 = vmul.f32 0.1, %v155_v35  ;;  %v192_v50 = vmul.f32 1.442695, %v169_v36  ;;  %v487_v52 = vld [vmem:[%s548_s1 + $0x68] sm:$0xff]  ;;  %v118_v61 = vsub.f32 %v86_v44, %v416_v4 }
   0xf   :  { %362 = vpow2.f32 %v186_v34  ;;  %v492_v53 = vld [vmem:[%s548_s1 + $0x70] sm:$0xff]  ;;  %v158_v56 = vand.u32 2147483647, %v478_v45  ;;  %v172_v57 = vmul.f32 0.1, %v156_v41  ;;  %v501_v60 = vld [vmem:[%s548_s1 + $0x78] sm:$0xff]  ;;  %v131_v62 = vmul.f32 %v115_v46, %v115_v46 }
  0x10   :  { %364 = vpow2.f32 %v188_v37  ;;  %v194_v58 = vmul.f32 1.442695, %v170_v42  ;;  %v88_v59 = vld [vmem:[%s549_s0 + $0x30] sm:$0xff]  ;;  %v132_v63 = vmul.f32 %v116_v47, %v116_v47  ;;  %v159_v0 = vand.u32 2147483647, %v487_v52  ;;  %v89_v11 = vld [vmem:[%s549_s0 + $0x38] sm:$0xff] }
  0x11   :  { %366 = vpow2.f32 %v190_v43  ;;  %v173_v1 = vmul.f32 0.1, %v157_v48  ;;  %v196_v2 = vmul.f32 1.442695, %v171_v49  ;;  %v119_v7 = vsub.f32 %v87_v51, %v421_v5  ;;  %v90_v21 = vld [vmem:[%s549_s0 + $0x40] sm:$0xff]  ;;  %v91_v31 = vld [vmem:[%s549_s0 + $0x48] sm:$0xff] }
  0x12   :  { %368 = vpow2.f32 %v192_v50  ;;  %v133_v8 = vmul.f32 %v117_v54, %v117_v54  ;;  %v160_v9 = vand.u32 2147483647, %v492_v53  ;;  %v174_v12 = vmul.f32 0.1, %v158_v56 }
  0x13   :  { %370 = vpow2.f32 %v194_v58  ;;  %v198_v4 = vmul.f32 1.442695, %v172_v57  ;;  %v120_v17 = vsub.f32 %v88_v59, %v426_v6  ;;  %v134_v18 = vmul.f32 %v118_v61, %v118_v61 }
  0x14   :  { %v161_v19 = vand.u32 2147483647, %v501_v60  ;;  %v175_v23 = vmul.f32 0.1, %v159_v0  ;;  %372 = vpow2.f32 %v196_v2  ;;  %v200_v24 = vmul.f32 1.442695, %v173_v1 }
  0x15   :  { %v355_v3 = vpop.eup %354  ;;  %v121_v27 = vsub.f32 %v89_v11, %v433_v13  ;;  %v135_v28 = vmul.f32 %v119_v7, %v119_v7  ;;  %v176_v32 = vmul.f32 0.1, %v160_v9  ;;  %374 = vpow2.f32 %v198_v4  ;;  %v92_v13 = vld [vmem:[%s549_s0 + $0x50] sm:$0xff]  ;;  %v97_v4 = vld [vmem:[%s549_s0 + $0x78] sm:$0xff] }
  0x16   :  { %v357_v10 = vpop.eup %356  ;;  %v210_v15 = vmul.f32 %v355_v3, %v130_v55  ;;  %v202_v34 = vmul.f32 1.442695, %v174_v12  ;;  %v122_v35 = vsub.f32 %v90_v21, %v438_v14  ;;  %v136_v36 = vmul.f32 %v120_v17, %v120_v17  ;;  %v93_v14 = vld [vmem:[%s549_s0 + $0x58] sm:$0xff] }
  0x17   :  { %v359_v16 = vpop.eup %358  ;;  %v211_v20 = vmul.f32 %v357_v10, %v131_v62  ;;  %v177_v41 = vmul.f32 0.1, %v161_v19  ;;  %376 = vpow2.f32 %v200_v24  ;;  %v204_v42 = vmul.f32 1.442695, %v175_v23 }
  0x18   :  { %v361_v5 = vpop.eup %360  ;;  %v212_v25 = vmul.f32 %v359_v16, %v132_v63  ;;  %v123_v43 = vsub.f32 %v91_v31, %v447_v22  ;;  %v137_v44 = vmul.f32 %v121_v27, %v121_v27  ;;  %378 = vpow2.f32 %v202_v34  ;;  %v94_v22 = vld [vmem:[%s549_s0 + $0x60] sm:$0xff] }
  0x19   :  { %v363_v26 = vpop.eup %362  ;;  %v213_v29 = vmul.f32 %v361_v5, %v133_v8  ;;  %v232_v30 = vadd.f32 %v211_v20, %v210_v15  ;;  %v206_v49 = vmul.f32 1.442695, %v176_v32  ;;  %v124_v50 = vsub.f32 %v92_v13, %v460_v33  ;;  %v95_v33 = vld [vmem:[%s549_s0 + $0x68] sm:$0xff]  ;;  %v96_v8 = vld [vmem:[%s549_s0 + $0x70] sm:$0xff] }
  0x1a   :  { %v365_v6 = vpop.eup %364  ;;  %v214_v37 = vmul.f32 %v363_v26, %v134_v18  ;;  %v138_v51 = vmul.f32 %v122_v35, %v122_v35  ;;  %380 = vpow2.f32 %v204_v42  ;;  %v208_v57 = vmul.f32 1.442695, %v177_v41 }
  0x1b   :  { %v233_v38 = vadd.f32 %v232_v30, %v212_v25  ;;  %v367_v40 = vpop.eup %366  ;;  %v215_v46 = vmul.f32 %v365_v6, %v135_v28  ;;  %v125_v58 = vsub.f32 %v93_v14, %v469_v39  ;;  %v139_v59 = vmul.f32 %v123_v43, %v123_v43 }
  0x1c   :  { %v369_v48 = vpop.eup %368  ;;  %v216_v54 = vmul.f32 %v367_v40, %v136_v36  ;;  %382 = vpow2.f32 %v206_v49  ;;  %v126_v0 = vsub.f32 %v94_v22, %v478_v45  ;;  %v140_v1 = vmul.f32 %v124_v50, %v124_v50 }
  0x1d   :  { %v234_v47 = vadd.f32 %v233_v38, %v213_v29  ;;  %v371_v56 = vpop.eup %370  ;;  %v217_v61 = vmul.f32 %v369_v48, %v137_v44  ;;  %384 = vpow2.f32 %v208_v57  ;;  %v127_v39 = vsub.f32 %v95_v33, %v487_v52 }
  0x1e   :  { %v373_v63 = vpop.eup %372  ;;  %v218_v2 = vmul.f32 %v371_v56, %v138_v51  ;;  %v141_v9 = vmul.f32 %v125_v58, %v125_v58  ;;  %v128_v45 = vsub.f32 %v96_v8, %v492_v53  ;;  %v142_v15 = vmul.f32 %v126_v0, %v126_v0 }
  0x1f   :  { %v235_v55 = vadd.f32 %v234_v47, %v214_v37  ;;  %v375_v7 = vpop.eup %374  ;;  %v219_v10 = vmul.f32 %v373_v63, %v139_v59  ;;  %v129_v19 = vsub.f32 %v97_v4, %v501_v60  ;;  %v143_v20 = vmul.f32 %v127_v39, %v127_v39 }
  0x20   :  { %v220_v16 = vmul.f32 %v375_v7, %v140_v1  ;;  %v144_v23 = vmul.f32 %v128_v45, %v128_v45 }
  0x21   :  { %v236_v62 = vadd.f32 %v235_v55, %v215_v46  ;;  %v377_v12 = vpop.eup %376  ;;  %v145_v27 = vmul.f32 %v129_v19, %v129_v19 }
  0x22   :  { %v379_v18 = vpop.eup %378  ;;  %v221_v5 = vmul.f32 %v377_v12, %v141_v9 }
  0x23   :  { %v237_v3 = vadd.f32 %v236_v62, %v216_v54  ;;  %v222_v24 = vmul.f32 %v379_v18, %v142_v15 }
  0x24   :  { %v381_v52 = vpop.eup %380 }
  0x25   :  { %v238_v11 = vadd.f32 %v237_v3, %v217_v61  ;;  %v223_v28 = vmul.f32 %v381_v52, %v143_v20 }
  0x26   :  { %v383_v26 = vpop.eup %382 }
  0x27   :  { %v239_v17 = vadd.f32 %v238_v11, %v218_v2  ;;  %v385_v30 = vpop.eup %384  ;;  %v224_v6 = vmul.f32 %v383_v26, %v144_v23 }
  0x28   :  { %v225_v31 = vmul.f32 %v385_v30, %v145_v27 }
  0x29   :  { %v240_v21 = vadd.f32 %v239_v17, %v219_v10 }
  0x2b   :  { %v241_v25 = vadd.f32 %v240_v21, %v220_v16 }
  0x2d   :  { %v242_v29 = vadd.f32 %v241_v25, %v221_v5 }
  0x2f   :  { %v243_v53 = vadd.f32 %v242_v29, %v222_v24 }
  0x31   :  { %v244_v32 = vadd.f32 %v243_v53, %v223_v28 }
  0x33   :  { %v245_v34 = vadd.f32 %v244_v32, %v224_v6 }
  0x35   :  { %v246_v35 = vadd.f32 %v245_v34, %v225_v31 }
  0x37   :  { %248 = vst [vmem:[%s550_s2] sm:$0xff] %v246_v35 }

</bundles_post_ra>
